<compile_context>
chip_gen: v6e
topology: v6e:2x2x1
jax: 0.10.0
libtpu: 0.0.40
codegen_flags: <defaults>
</compile_context>

<pallas_src>
import functools

import jax
import jax.numpy as jnp
from jax.experimental import pallas as pl
from jax.experimental.pallas import tpu as pltpu


def _make_mean_net_kernel(n_linear):
    """Fused MLP forward kernel. n_linear = n_layers + 1 linear layers."""

    def kernel(*refs):
        # refs layout:
        #   obs_ref,
        #   w0, b0, w1, b1, ..., w_{L-1}, b_{L-1},
        #   mean_ref (out)
        obs_ref = refs[0]
        wb_refs = refs[1 : 1 + 2 * n_linear]
        mean_ref = refs[1 + 2 * n_linear]

        x = obs_ref[...].astype(jnp.float32)
        for i in range(n_linear):
            w = wb_refs[2 * i][...]        # [in, out]
            b = wb_refs[2 * i + 1][...]    # [1, out]
            x = jnp.dot(x, w, preferred_element_type=jnp.float32) + b
            if i < n_linear - 1:
                x = jnp.tanh(x)            # build_mlp uses Tanh between layers
        # TODO(synk): if a v5e profile shows the store slot binding, pad the
        # final layer to 128 output lanes and slice [:, :ac_dim] in the wrapper.
        mean_ref[...] = x.astype(mean_ref.dtype)

    return kernel


def init_mlp_policy_params(key, ob_dim, ac_dim, n_layers, size):
    """Deterministic init mimicking PyTorch nn.Linear default (uniform +-1/sqrt(fan_in))."""
    dims = [ob_dim] + [size] * n_layers + [ac_dim]
    params = []
    for i in range(len(dims) - 1):
        fan_in, fan_out = dims[i], dims[i + 1]
        key, kw, kb = jax.random.split(key, 3)
        bound = 1.0 / jnp.sqrt(jnp.float32(fan_in))
        w = jax.random.uniform(kw, (fan_in, fan_out), jnp.float32, -bound, bound)
        b = jax.random.uniform(kb, (1, fan_out), jnp.float32, -bound, bound)
        params.append((w, b))
    logstd = jnp.zeros((1, ac_dim), jnp.float32)  # nn.Parameter(torch.zeros(ac_dim))
    return params, logstd


def _round_up(x, m):
    return (x + m - 1) // m * m


@functools.partial(jax.jit, static_argnames=("n_layers", "tile_b"))
def mlp_policy_forward(obs, params_flat, logstd, *, n_layers, tile_b=512):
    """Returns (mean [B, ac_dim], cov_diag [ac_dim]) of the MultivariateNormal.

    cov_diag = exp(logstd), matching the PyTorch module's
    MultivariateNormal(mean, covariance_matrix=diag(exp(logstd))).
    """
    n_linear = n_layers + 1
    batch, ob_dim = obs.shape
    ac_dim = logstd.shape[-1]

    # Batch tile: multiple of 8 sublanes, capped at tile_b (~512 rows keeps the
    # live f32 activation slab small and amortizes per-step overhead; VMEM is
    # not the binding constraint for this model even on v7x's 64 MiB).
    tb = min(tile_b, _round_up(batch, 8))
    padded_batch = _round_up(batch, tb)
    if padded_batch != batch:
        obs = jnp.pad(obs, ((0, padded_batch - batch), (0, 0)))
    grid = (padded_batch // tb,)

    kernel = _make_mean_net_kernel(n_linear)

    # obs is streamed per batch tile; every weight/bias uses a constant
    # index_map so it is DMA'd once and stays VMEM-resident across the grid.
    in_specs = [pl.BlockSpec((tb, ob_dim), lambda i: (i, 0))]
    for p in params_flat:
        in_specs.append(pl.BlockSpec(p.shape, lambda i: (0, 0)))
    out_specs = pl.BlockSpec((tb, ac_dim), lambda i: (i, 0))

    mean = pl.pallas_call(
        kernel,
        out_shape=jax.ShapeDtypeStruct((padded_batch, ac_dim), jnp.float32),
        grid=grid,
        in_specs=in_specs,
        out_specs=out_specs,
        compiler_params=pltpu.CompilerParams(
            dimension_semantics=("parallel",),  # megacore sharding on v7x
        ),
    )(obs, *params_flat)

    mean = mean[:batch]
    # Glue (tiny, done outside the kernel): covariance diagonal = exp(logstd),
    # exactly as in torch.diag(torch.exp(self.logstd)).
    cov_diag = jnp.exp(logstd[0])
    return mean, cov_diag


def reference_forward(obs, params, logstd, n_layers):
    x = obs
    n_linear = n_layers + 1
    for i, (w, b) in enumerate(params):
        x = x @ w + b
        if i < n_linear - 1:
            x = jnp.tanh(x)
    return x, jnp.exp(logstd[0])


if __name__ == "__main__":
    # Small shapes consistent with the module: ob_dim=4, ac_dim=2, 2 hidden layers of 32.
    batch, ob_dim, ac_dim, n_layers, size = 8, 4, 2, 2, 32

    key = jax.random.PRNGKey(0)
    key, k_obs = jax.random.split(key)
    obs = jax.random.normal(k_obs, (batch, ob_dim), jnp.float32)

    params, logstd = init_mlp_policy_params(key, ob_dim, ac_dim, n_layers, size)
    params_flat = tuple(t for wb in params for t in wb)

    mean, cov_diag = mlp_policy_forward(obs, params_flat, logstd, n_layers=n_layers)
    jax.block_until_ready((mean, cov_diag))

    ref_mean, ref_cov = reference_forward(obs, params, logstd, n_layers)
    assert mean.shape == (batch, ac_dim)
    assert cov_diag.shape == (ac_dim,)
    assert jnp.allclose(mean, ref_mean, atol=1e-5, rtol=1e-5)
    assert jnp.allclose(cov_diag, ref_cov, atol=1e-6)

    # Second check: exercise the batch grid + remainder padding path.
    batch2 = 200
    key, k_obs2 = jax.random.split(key)
    obs2 = jax.random.normal(k_obs2, (batch2, ob_dim), jnp.float32)
    mean2, cov_diag2 = mlp_policy_forward(
        obs2, params_flat, logstd, n_layers=n_layers, tile_b=64
    )
    jax.block_until_ready((mean2, cov_diag2))
    ref_mean2, _ = reference_forward(obs2, params, logstd, n_layers)
    assert mean2.shape == (batch2, ac_dim)
    assert jnp.allclose(mean2, ref_mean2, atol=1e-5, rtol=1e-5)

    # Full covariance matrix (glue, equivalent to torch.diag(torch.exp(logstd))):
    cov = jnp.diag(cov_diag)
    jax.block_until_ready(cov)

    print("KERNEL_OK")
</pallas_src>

<mosaic_0001>
module attributes {stable_mosaic.version = 11 : i64} {
  func.func @kernel(%arg0: i32, %arg1: memref<8x4xf32, #tpu.memory_space<vmem>>, %arg2: memref<4x32xf32, #tpu.memory_space<vmem>>, %arg3: memref<1x32xf32, #tpu.memory_space<vmem>>, %arg4: memref<32x32xf32, #tpu.memory_space<vmem>>, %arg5: memref<1x32xf32, #tpu.memory_space<vmem>>, %arg6: memref<32x2xf32, #tpu.memory_space<vmem>>, %arg7: memref<1x2xf32, #tpu.memory_space<vmem>>, %arg8: memref<8x2xf32, #tpu.memory_space<vmem>>) attributes {dimension_semantics = [#tpu.dimension_semantics<parallel>], iteration_bounds = array<i64: 1>, scalar_prefetch = 0 : i64, scratch_operands = 0 : i64, tpu.core_type = #tpu.core_type<tc>, window_params = [{transform_indices = @transform_0, window_bounds = array<i64: 8, 4>}, {pipeline_mode = #tpu.pipeline_mode<synchronous>, transform_indices = @transform_1, window_bounds = array<i64: 4, 32>}, {pipeline_mode = #tpu.pipeline_mode<synchronous>, transform_indices = @transform_2, window_bounds = array<i64: 1, 32>}, {pipeline_mode = #tpu.pipeline_mode<synchronous>, transform_indices = @transform_3, window_bounds = array<i64: 32, 32>}, {pipeline_mode = #tpu.pipeline_mode<synchronous>, transform_indices = @transform_4, window_bounds = array<i64: 1, 32>}, {pipeline_mode = #tpu.pipeline_mode<synchronous>, transform_indices = @transform_5, window_bounds = array<i64: 32, 2>}, {pipeline_mode = #tpu.pipeline_mode<synchronous>, transform_indices = @transform_6, window_bounds = array<i64: 1, 2>}, {transform_indices = @transform_7, window_bounds = array<i64: 8, 2>}]} {
    %c0 = arith.constant 0 : index
    %c0_0 = arith.constant 0 : index
    %0 = vector.load %arg1[%c0, %c0_0] : memref<8x4xf32, #tpu.memory_space<vmem>>, vector<8x4xf32>
    %c0_1 = arith.constant 0 : index
    %c0_2 = arith.constant 0 : index
    %1 = vector.load %arg2[%c0_1, %c0_2] : memref<4x32xf32, #tpu.memory_space<vmem>>, vector<4x32xf32>
    %c0_3 = arith.constant 0 : index
    %c0_4 = arith.constant 0 : index
    %2 = vector.load %arg3[%c0_3, %c0_4] : memref<1x32xf32, #tpu.memory_space<vmem>>, vector<1x32xf32>
    %cst = arith.constant dense<0.000000e+00> : vector<8x32xf32>
    %3 = tpu.matmul %0, %1, %cst {dimension_numbers = #tpu.dot_dimension_numbers<[1], [0], [0], [1], [0, 0, 1, 1], [], []>} : vector<8x4xf32>, vector<4x32xf32>, vector<8x32xf32> -> vector<8x32xf32>
    %4 = vector.broadcast %2 : vector<1x32xf32> to vector<8x32xf32>
    %5 = arith.addf %3, %4 : vector<8x32xf32>
    %6 = math.tanh %5 : vector<8x32xf32>
    %c0_5 = arith.constant 0 : index
    %c0_6 = arith.constant 0 : index
    %7 = vector.load %arg4[%c0_5, %c0_6] : memref<32x32xf32, #tpu.memory_space<vmem>>, vector<32x32xf32>
    %c0_7 = arith.constant 0 : index
    %c0_8 = arith.constant 0 : index
    %8 = vector.load %arg5[%c0_7, %c0_8] : memref<1x32xf32, #tpu.memory_space<vmem>>, vector<1x32xf32>
    %cst_9 = arith.constant dense<0.000000e+00> : vector<8x32xf32>
    %9 = tpu.matmul %6, %7, %cst_9 {dimension_numbers = #tpu.dot_dimension_numbers<[1], [0], [0], [1], [0, 0, 1, 1], [], []>} : vector<8x32xf32>, vector<32x32xf32>, vector<8x32xf32> -> vector<8x32xf32>
    %10 = vector.broadcast %8 : vector<1x32xf32> to vector<8x32xf32>
    %11 = arith.addf %9, %10 : vector<8x32xf32>
    %12 = math.tanh %11 : vector<8x32xf32>
    %c0_10 = arith.constant 0 : index
    %c0_11 = arith.constant 0 : index
    %13 = vector.load %arg6[%c0_10, %c0_11] : memref<32x2xf32, #tpu.memory_space<vmem>>, vector<32x2xf32>
    %c0_12 = arith.constant 0 : index
    %c0_13 = arith.constant 0 : index
    %14 = vector.load %arg7[%c0_12, %c0_13] : memref<1x2xf32, #tpu.memory_space<vmem>>, vector<1x2xf32>
    %cst_14 = arith.constant dense<0.000000e+00> : vector<8x2xf32>
    %15 = tpu.matmul %12, %13, %cst_14 {dimension_numbers = #tpu.dot_dimension_numbers<[1], [0], [0], [1], [0, 0, 1, 1], [], []>} : vector<8x32xf32>, vector<32x2xf32>, vector<8x2xf32> -> vector<8x2xf32>
    %16 = vector.broadcast %14 : vector<1x2xf32> to vector<8x2xf32>
    %17 = arith.addf %15, %16 : vector<8x2xf32>
    %c0_15 = arith.constant 0 : index
    %c0_16 = arith.constant 0 : index
    %18 = vector.load %arg8[%c0_15, %c0_16] : memref<8x2xf32, #tpu.memory_space<vmem>>, vector<8x2xf32>
    tpu.vector_store %arg8[%c0_15, %c0_16], %17 {strides = array<i32>} : memref<8x2xf32, #tpu.memory_space<vmem>>, vector<8x2xf32>,
    return
  }
  func.func @transform_0(%arg0: i32) -> (i32, i32) {
    %c0_i32 = arith.constant 0 : i32
    %c0_i32_0 = arith.constant 0 : i32
    return %arg0, %c0_i32 : i32, i32
  }
  func.func @transform_1(%arg0: i32) -> (i32, i32) {
    %c0_i32 = arith.constant 0 : i32
    %c0_i32_0 = arith.constant 0 : i32
    %c0_i32_1 = arith.constant 0 : i32
    return %c0_i32, %c0_i32_0 : i32, i32
  }
  func.func @transform_2(%arg0: i32) -> (i32, i32) {
    %c0_i32 = arith.constant 0 : i32
    %c0_i32_0 = arith.constant 0 : i32
    %c0_i32_1 = arith.constant 0 : i32
    return %c0_i32, %c0_i32_0 : i32, i32
  }
  func.func @transform_3(%arg0: i32) -> (i32, i32) {
    %c0_i32 = arith.constant 0 : i32
    %c0_i32_0 = arith.constant 0 : i32
    %c0_i32_1 = arith.constant 0 : i32
    return %c0_i32, %c0_i32_0 : i32, i32
  }
  func.func @transform_4(%arg0: i32) -> (i32, i32) {
    %c0_i32 = arith.constant 0 : i32
    %c0_i32_0 = arith.constant 0 : i32
    %c0_i32_1 = arith.constant 0 : i32
    return %c0_i32, %c0_i32_0 : i32, i32
  }
  func.func @transform_5(%arg0: i32) -> (i32, i32) {
    %c0_i32 = arith.constant 0 : i32
    %c0_i32_0 = arith.constant 0 : i32
    %c0_i32_1 = arith.constant 0 : i32
    return %c0_i32, %c0_i32_0 : i32, i32
  }
  func.func @transform_6(%arg0: i32) -> (i32, i32) {
    %c0_i32 = arith.constant 0 : i32
    %c0_i32_0 = arith.constant 0 : i32
    %c0_i32_1 = arith.constant 0 : i32
    return %c0_i32, %c0_i32_0 : i32, i32
  }
  func.func @transform_7(%arg0: i32) -> (i32, i32) {
    %c0_i32 = arith.constant 0 : i32
    %c0_i32_0 = arith.constant 0 : i32
    return %arg0, %c0_i32 : i32, i32
  }
}

</mosaic_0001>

<bundles_post_ra>
// kernel: mlp_policy_forward.1
= control target key start
LH: loop header
LB: loop body
LE: loop exit
PB: predicated region body
PF: predicated region fallthrough
CT: control target
= control target key end

     0   :  { %vm39_vm0 = vcmask 1043456   ;;  %vm35_vm1 = vcmask 31744   ;;  %v342_v0 = vmov 0.0   ;;  %vm343_vm2 = vmmov 0   ;;  %s428_s1 = inlined_call_operand.vmem [shape: f32[4,32], index: 1, kind: input, shape index: {}]   ;;  %s429_s0 = inlined_call_operand.vmem [shape: f32[8,4], index: 0, kind: input, shape index: {}]   ;;  %s430_s3 = inlined_call_operand.vmem [shape: f32[32,32], index: 3, kind: input, shape index: {}]   ;;  %s431_s2 = inlined_call_operand.vmem [shape: f32[1,32], index: 2, kind: input, shape index: {}]   ;;  %s432_s5 = inlined_call_operand.vmem [shape: f32[32,2], index: 5, kind: input, shape index: {}]   ;;  %s433_s4 = inlined_call_operand.vmem [shape: f32[1,32], index: 4, kind: input, shape index: {}]   ;;  %s434_s6 = inlined_call_operand.vmem [shape: f32[1,2], index: 6, kind: input, shape index: {}]   ;;  %s435_s7 = inlined_call_operand.vmem [shape: f32[8,2], index: 7, kind: output, shape index: {}]  }
   0x1   :  { %309 = vmatprep.subr.mxu0 %v342_v0  ;;  %v27_v1 = vld [vmem:[%s428_s1] sm:$0xf]  ;;  %311 = vmatprep.mubr.msk.f32.mxu0 %vm343_vm2, %v342_v0  ;;  %v117_v3 = vld [vmem:[%s430_s3 + $0x18] sm:$0xff]  ;;  %v116_v4 = vld [vmem:[%s430_s3 + $0x10] sm:$0xff]  ;;  %vm125_vm3 = vcmask 261120   ;;  %vm284_vm4 = vcmask 15360  }
   0x2   :  { %v26_v2 = vld [vmem:[%s429_s0] sm:$0xff]  ;;  %310 = vmatpush3.msk.msra.mxu0 %vm39_vm0, %v27_v1  ;;  %314 = vmatprep.subr.mxu1 %v342_v0  ;;  %v115_v5 = vld [vmem:[%s430_s3 + $0x8] sm:$0xff]  ;;  %v203_v12 = vld [vmem:[%s432_s5 + $0x18] sm:$0xff] }
   0x3   :  { %312 = vmatmul.mubr.msk.f32.vlgmr.msra.gmra.mxu0 %vm35_vm1, %v26_v2  ;;  %322 = vmatprep.mubr.msk.f32.mxu1 %vm343_vm2, %v342_v0  ;;  %v114_v6 = vld [vmem:[%s430_s3] sm:$0xff]  ;;  %v202_v13 = vld [vmem:[%s432_s5 + $0x10] sm:$0xff]  ;;  %v201_v14 = vld [vmem:[%s432_s5 + $0x8] sm:$0xff] }
   0x4   :  { %325 = vmatprep.subr.mxu0 %v342_v0  ;;  %333 = vmatprep.mubr.msk.f32.mxu0 %vm343_vm2, %v342_v0  ;;  %v290_v7 = vld [vmem:[%s431_s2] ss:$0 sm:$0xff] }
   0x5   :  { %315 = vmatpush3.msra.mxu1 %v117_v3  ;;  %326 = vmatpush3.msra.mxu0 %v203_v12  ;;  %v200_v15 = vld [vmem:[%s432_s5] sm:$0xff] }
   0x6   :  { %316 = vmatprep.subr.mxu1 %v342_v0  ;;  %327 = vmatprep.subr.mxu0 %v342_v0  ;;  %v293_v16 = vld [vmem:[%s433_s4] ss:$0 sm:$0xff] }
   0x7   :  { %317 = vmatpush3.msra.mxu1 %v116_v4  ;;  %328 = vmatpush3.msra.mxu0 %v202_v13  ;;  %v295_v21 = vld [vmem:[%s434_s6] ss:$0 sm:$0xff] }
   0x8   :  { %318 = vmatprep.subr.mxu1 %v342_v0  ;;  %329 = vmatprep.subr.mxu0 %v342_v0 }
   0x9   :  { %319 = vmatpush3.msra.mxu1 %v115_v5  ;;  %330 = vmatpush3.msra.mxu0 %v201_v14 }
   0xa   :  { %320 = vmatprep.subr.mxu1 %v342_v0  ;;  %331 = vmatprep.subr.mxu0 %v342_v0 }
   0xb   :  { %321 = vmatpush3.msra.mxu1 %v114_v6  ;;  %332 = vmatpush3.msra.mxu0 %v200_v15 }
  0xc3   :  { %v109_v8 = vpop.f32.mrf.mxu0 }
  0xc4   :  { %v110_v9 = vadd.f32 %v290_v7, %v109_v8 }
  0xc5   :  { %v313_v10 = vpop.f32.mrf.mxu0 }
  0xc6   :  { %338 = vtanh.f32 %v110_v9 }
  0xd3   :  { %v339_v11 = vpop.eup %338 }
  0xd4   :  { %323 = vmatmul.mubr.msk.f32.vlgmr.msra.gmra.mxu1 %vm125_vm3, %v339_v11 }
 0x194   :  { %v195_v17 = vpop.f32.mrf.mxu1 }
 0x195   :  { %v196_v18 = vadd.f32 %v293_v16, %v195_v17 }
 0x196   :  { %v324_v19 = vpop.f32.mrf.mxu1 }
 0x197   :  { %340 = vtanh.f32 %v196_v18 }
 0x1a4   :  { %v341_v20 = vpop.eup %340 }
 0x1a5   :  { %334 = vmatmul.mubr.msk.f32.vlgmr.msra.gmra.mxu0 %vm125_vm3, %v341_v20 }
 0x265   :  { %v280_v22 = vpop.f32.mrf.mxu0 }
 0x266   :  { %v281_v23 = vadd.f32 %v295_v21, %v280_v22 }
 0x267   :  { %v335_v24 = vpop.f32.mrf.mxu0 }
 0x268   :  { %285 = vst.msk [vmem:[%s435_s7] sm:$0xff] %vm284_vm4, %v281_v23 }

</bundles_post_ra>
